<compile_context>
chip_gen: v5e
topology: v5e:2x2
jax: 0.10.0
libtpu: 0.0.40
codegen_flags: <defaults>
</compile_context>

<pallas_src>
import jax
import jax.numpy as jnp
from jax.experimental import pallas as pl
from jax.experimental.pallas import tpu as pltpu

HIDDEN = 128


def _round_up(x, m):
    return ((x + m - 1) // m) * m


def discriminator_kernel(x_ref, w1_ref, bw_ref, b2_ref, o_ref):
    # x_ref:  (TILE_B, D)   streamed batch tile (auto double-buffered)
    # w1_ref: (D, 128)      f32, VMEM-resident (transposed nn.Linear weight)
    # bw_ref: (2, 128)      f32, VMEM-resident: row 0 = b1, row 1 = w2
    # b2_ref: (1,)          f32, SMEM scalar
    # o_ref:  (1, TILE_B)   f32, lane-dense output row for this tile

    # Layer 1 on the MXU: in-kernel bf16 cast (rides spare VALU slots; avoids
    # an extra wrapper-side HBM pass over x), f32 accumulate, bias + ReLU.
    x = x_ref[...].astype(jnp.bfloat16)
    w1 = w1_ref[...].astype(jnp.bfloat16)
    h = jnp.dot(x, w1, preferred_element_type=jnp.float32)        # (TILE_B, 128)
    h = jnp.maximum(h + bw_ref[0:1, :], 0.0)

    # Layer 2 (128 -> 1) as a lane-dense MXU dot: w2 @ h^T -> (1, TILE_B).
    z = jax.lax.dot_general(
        bw_ref[1:2, :], h,
        dimension_numbers=(((1,), (1,)), ((), ())),
        preferred_element_type=jnp.float32,
    )                                                              # (1, TILE_B)

    # Bias + sigmoid (EUP), dense 128-lane store.
    o_ref[...] = jax.nn.sigmoid(z + b2_ref[0])


def _pick_tile_b(batch, d):
    """Batch-tile rows: ~2 MiB of x per step, clamped, sublane aligned."""
    if batch <= 1024:
        return _round_up(batch, 8)
    target_rows = (2 << 20) // (4 * d)
    tile = max(256, min(4096, (target_rows // 256) * 256))
    # Keep >= 2 grid steps so a v7x megacore can shard the batch axis.
    tile = min(tile, _round_up(pl.cdiv(batch, 2), 256))
    return tile


def discriminator_forward(x, w1, b1, w2, b2):
    """x: (B, D). PyTorch shapes: w1 (128, D), b1 (128,), w2 (1, 128), b2 (1,)."""
    B, D = x.shape
    TILE_B = _pick_tile_b(B, D)
    grid_b = pl.cdiv(B, TILE_B)
    n_rows = grid_b * TILE_B
    itemsize = jnp.dtype(x.dtype).itemsize

    # Tiny one-time parameter prep (glue, not hot path).  NOTE: the big
    # operand x is streamed as-is -- no wrapper-side cast / pad copy; a
    # ragged last tile relies on Pallas boundary-block handling (those
    # output columns are sliced off below).
    w1_t = w1.T.astype(jnp.float32)                                # (D, 128)
    bw = jnp.concatenate(
        [b1.reshape(1, HIDDEN), w2.reshape(1, HIDDEN)], axis=0
    ).astype(jnp.float32)                                          # (2, 128)
    b2_1d = b2.reshape(1).astype(jnp.float32)                      # (1,) -> SMEM

    # Explicit VMEM budget (double-buffered x stream + resident params +
    # output rows + intermediates), clamped to the 64 MiB v7x physical limit.
    vmem_estimate = (
        2 * TILE_B * D * itemsize          # x (2 pipeline buffers)
        + 2 * D * HIDDEN * 4               # w1 (resident, 2 buffers)
        + 2 * 2 * HIDDEN * 4               # b1/w2
        + 2 * TILE_B * 4                   # output rows
        + TILE_B * HIDDEN * 4              # h intermediate
        + TILE_B * D * 2                   # in-kernel bf16 copy headroom
        + (2 << 20)                        # slack
    )
    vmem_limit = int(min(64 << 20, max(32 << 20, _round_up(vmem_estimate, 1 << 20))))

    cost = pl.CostEstimate(
        flops=2 * n_rows * D * HIDDEN + 2 * n_rows * HIDDEN,
        transcendentals=2 * n_rows,        # sigmoid ~ exp + reciprocal per elem
        bytes_accessed=(n_rows * D * itemsize      # x
                        + D * HIDDEN * 4           # w1
                        + 2 * HIDDEN * 4 + 4       # b1/w2, b2
                        + n_rows * 4),             # output
    )

    out = pl.pallas_call(
        discriminator_kernel,
        out_shape=jax.ShapeDtypeStruct((grid_b, TILE_B), jnp.float32),
        grid_spec=pltpu.PrefetchScalarGridSpec(
            num_scalar_prefetch=0,
            grid=(grid_b,),
            in_specs=[
                pl.BlockSpec((TILE_B, D), lambda i: (i, 0)),        # x: streamed
                pl.BlockSpec((D, HIDDEN), lambda i: (0, 0)),        # w1: resident
                pl.BlockSpec((2, HIDDEN), lambda i: (0, 0)),        # b1/w2: resident
                pl.BlockSpec(memory_space=pltpu.MemorySpace.SMEM),  # b2: SMEM scalar
            ],
            out_specs=pl.BlockSpec((1, TILE_B), lambda i: (i, 0)),  # lane-dense row
        ),
        compiler_params=pltpu.CompilerParams(
            dimension_semantics=("parallel",),
            vmem_limit_bytes=vmem_limit,
        ),
        cost_estimate=cost,
    )(x, w1_t, bw, b2_1d)

    # (grid_b, TILE_B) row-major -> (B, 1); discard padded tail columns.
    return out.reshape(n_rows)[:B].reshape(B, 1)


def reference_forward(x, w1, b1, w2, b2):
    h = jnp.maximum(x @ w1.T + b1, 0.0)
    return jax.nn.sigmoid(h @ w2.T + b2)


if __name__ == "__main__":
    key = jax.random.PRNGKey(0)
    B, INPUT_DIM = 8, 32

    k_x, k_w1, k_b1, k_w2, k_b2 = jax.random.split(key, 5)
    x = jax.random.normal(k_x, (B, INPUT_DIM), dtype=jnp.float32)

    # Deterministic synthetic parameters (PyTorch nn.Linear shapes).
    bound1 = 1.0 / jnp.sqrt(INPUT_DIM)
    w1 = jax.random.uniform(k_w1, (HIDDEN, INPUT_DIM), jnp.float32, -bound1, bound1)
    b1 = jax.random.uniform(k_b1, (HIDDEN,), jnp.float32, -bound1, bound1)
    bound2 = 1.0 / jnp.sqrt(HIDDEN)
    w2 = jax.random.uniform(k_w2, (1, HIDDEN), jnp.float32, -bound2, bound2)
    b2 = jax.random.uniform(k_b2, (1,), jnp.float32, -bound2, bound2)

    out = jax.jit(discriminator_forward)(x, w1, b1, w2, b2)
    jax.block_until_ready(out)

    ref = reference_forward(x, w1, b1, w2, b2)
    assert out.shape == (B, 1)
    # bf16 layer-1 matmul (deliberate tradeoff) -> relaxed tolerance.
    assert jnp.allclose(out, ref, atol=1e-2, rtol=1e-2)

    print("KERNEL_OK")
</pallas_src>

<mosaic_0001>
module attributes {stable_mosaic.version = 11 : i64} {
  func.func @discriminator_kernel(%arg0: i32, %arg1: memref<8x32xf32, #tpu.memory_space<vmem>>, %arg2: memref<32x128xf32, #tpu.memory_space<vmem>>, %arg3: memref<2x128xf32, #tpu.memory_space<vmem>>, %arg4: memref<1xf32, #tpu.memory_space<smem>>, %arg5: memref<1x8xf32, #tpu.memory_space<vmem>>) attributes {dimension_semantics = [#tpu.dimension_semantics<parallel>], iteration_bounds = array<i64: 1>, scalar_prefetch = 0 : i64, scratch_operands = 0 : i64, tpu.core_type = #tpu.core_type<tc>, window_params = [{transform_indices = @transform_0, window_bounds = array<i64: 8, 32>}, {pipeline_mode = #tpu.pipeline_mode<synchronous>, transform_indices = @transform_1, window_bounds = array<i64: 32, 128>}, {pipeline_mode = #tpu.pipeline_mode<synchronous>, transform_indices = @transform_2, window_bounds = array<i64: 2, 128>}, {transform_indices = @transform_3, window_bounds = array<i64: 1>}, {transform_indices = @transform_4, window_bounds = array<i64: 1, 8>}]} {
    %c0 = arith.constant 0 : index
    %c0_0 = arith.constant 0 : index
    %0 = vector.load %arg1[%c0, %c0_0] : memref<8x32xf32, #tpu.memory_space<vmem>>, vector<8x32xf32>
    %1 = arith.truncf %0 : vector<8x32xf32> to vector<8x32xbf16>
    %c0_1 = arith.constant 0 : index
    %c0_2 = arith.constant 0 : index
    %2 = vector.load %arg2[%c0_1, %c0_2] : memref<32x128xf32, #tpu.memory_space<vmem>>, vector<32x128xf32>
    %3 = arith.truncf %2 : vector<32x128xf32> to vector<32x128xbf16>
    %cst = arith.constant dense<0.000000e+00> : vector<8x128xf32>
    %4 = tpu.matmul %1, %3, %cst {dimension_numbers = #tpu.dot_dimension_numbers<[1], [0], [0], [1], [0, 0, 1, 1], [], []>} : vector<8x32xbf16>, vector<32x128xbf16>, vector<8x128xf32> -> vector<8x128xf32>
    %c0_3 = arith.constant 0 : index
    %c0_4 = arith.constant 0 : index
    %5 = vector.load %arg3[%c0_3, %c0_4] : memref<2x128xf32, #tpu.memory_space<vmem>>, vector<1x128xf32>
    %6 = vector.broadcast %5 : vector<1x128xf32> to vector<8x128xf32>
    %7 = arith.addf %4, %6 : vector<8x128xf32>
    %cst_5 = arith.constant 0.000000e+00 : f32
    %8 = vector.broadcast %cst_5 : f32 to vector<8x128xf32>
    %9 = arith.maximumf %7, %8 : vector<8x128xf32>
    %c1 = arith.constant 1 : index
    %c0_6 = arith.constant 0 : index
    %10 = vector.load %arg3[%c1, %c0_6] : memref<2x128xf32, #tpu.memory_space<vmem>>, vector<1x128xf32>
    %cst_7 = arith.constant dense<0.000000e+00> : vector<1x8xf32>
    %11 = tpu.matmul %10, %9, %cst_7 {dimension_numbers = #tpu.dot_dimension_numbers<[1], [1], [0], [0], [0, 0, 1, 0], [], []>} : vector<1x128xf32>, vector<8x128xf32>, vector<1x8xf32> -> vector<1x8xf32>
    %c0_8 = arith.constant 0 : index
    %12 = memref.load %arg4[%c0_8] : memref<1xf32, #tpu.memory_space<smem>>
    %13 = vector.broadcast %12 : f32 to vector<1x8xf32>
    %14 = arith.addf %11, %13 : vector<1x8xf32>
    %15 = arith.negf %14 : vector<1x8xf32>
    %16 = math.exp %15 : vector<1x8xf32>
    %cst_9 = arith.constant 1.000000e+00 : f32
    %17 = vector.broadcast %cst_9 : f32 to vector<1x8xf32>
    %18 = arith.addf %17, %16 : vector<1x8xf32>
    %19 = arith.divf %17, %18 : vector<1x8xf32>
    %c0_10 = arith.constant 0 : index
    %c0_11 = arith.constant 0 : index
    %20 = vector.load %arg5[%c0_10, %c0_11] : memref<1x8xf32, #tpu.memory_space<vmem>>, vector<1x8xf32>
    tpu.vector_store %arg5[%c0_10, %c0_11], %19 {strides = array<i32>} : memref<1x8xf32, #tpu.memory_space<vmem>>, vector<1x8xf32>,
    return
  }
  func.func @transform_0(%arg0: i32) -> (i32, i32) {
    %c0_i32 = arith.constant 0 : i32
    %c0_i32_0 = arith.constant 0 : i32
    return %arg0, %c0_i32 : i32, i32
  }
  func.func @transform_1(%arg0: i32) -> (i32, i32) {
    %c0_i32 = arith.constant 0 : i32
    %c0_i32_0 = arith.constant 0 : i32
    %c0_i32_1 = arith.constant 0 : i32
    return %c0_i32, %c0_i32_0 : i32, i32
  }
  func.func @transform_2(%arg0: i32) -> (i32, i32) {
    %c0_i32 = arith.constant 0 : i32
    %c0_i32_0 = arith.constant 0 : i32
    %c0_i32_1 = arith.constant 0 : i32
    return %c0_i32, %c0_i32_0 : i32, i32
  }
  func.func @transform_3(%arg0: i32) -> i32 {
    %c0_i32 = arith.constant 0 : i32
    %c0_i32_0 = arith.constant 0 : i32
    return %c0_i32 : i32
  }
  func.func @transform_4(%arg0: i32) -> (i32, i32) {
    %c0_i32 = arith.constant 0 : i32
    %c0_i32_0 = arith.constant 0 : i32
    return %arg0, %c0_i32 : i32, i32
  }
}

</mosaic_0001>

<bundles_post_ra>
// kernel: discriminator_forward.1
= control target key start
LH: loop header
LB: loop body
LE: loop exit
PB: predicated region body
PF: predicated region fallthrough
CT: control target
= control target key end

     0   :  { %10 = vsyncpa [#allocation4], 0  ;;  %s278_s0 = inlined_call_operand.hbm [shape: f32[8,32], index: 0, kind: input, shape index: {}]   ;;  %s279_s1 = inlined_call_operand.hbm [shape: f32[32,128], index: 1, kind: input, shape index: {}]   ;;  %s280_s2 = inlined_call_operand.vmem [shape: f32[2,128], index: 2, kind: input, shape index: {}]   ;;  %s281_s3 = inlined_call_operand.<no memory space> [shape: f32[1], index: 3, kind: input, shape index: {}]   ;;  %s282_s4 = inlined_call_operand.hbm [shape: f32[1,8], index: 4, kind: output, shape index: {}]  }
   0x1   :  { %11 = vsyncpa [#allocation7], 0 }
   0x2   :  { %12 = vsyncpa [#allocation5], 0  ;;  %s18_s17 = sshll.u32 %s278_s0, 4  ;;  %s230_s18 = smov [#allocation3]   ;;  %s19_s17 = int_to_ptr.hbm [resolvable:$true] %s18_s17 }
   0x3   :  { %s20_s19 = sshll.u32 %s230_s18, 4  ;;  %s28_s22 = sshll.u32 %s279_s1, 4  ;;  %s21_s19 = int_to_ptr.vmem [resolvable:$true] %s20_s19  ;;  %s29_s22 = int_to_ptr.hbm [resolvable:$true] %s28_s22 }
   0x4   :  { %23 = dma.hbm_to_vmem [thread:$0]  %s19_s17, 128, %s21_s19, [#allocation4]  }
   0x5   :  { %s231_s23 = smov [#allocation6]   ;;  %s232_s25 = smov 128  }
   0x6   :  { %s30_s24 = sshll.u32 %s231_s23, 4  ;;  %s233_s26 = smov 8   ;;  %s31_s24 = int_to_ptr.vmem [resolvable:$true] %s30_s24 }
   0x7   :  { %36 = dma.hbm_to_vmem [thread:$0]  %s29_s22, 512, %s31_s24, [#allocation7], %s232_s25, %s232_s25, %s233_s26  }
   0x8   :  { %224 = dma.done.wait [#allocation4], 128  }
   0x9   :  { %225 = vsyncadd [#allocation4], 4294967168 }
   0xa   :  { %226 = dma.done.wait [#allocation7], 512  }
   0xb   :  { %227 = vsyncadd [#allocation7], 4294966784  ;;  %v54_v0 = vld [vmem:[#allocation6 + $0x10] sm:$0xff]  ;;  %v55_v1 = vld [vmem:[#allocation6 + $0x18] sm:$0xff]  ;;  %vm60_vm0 = vcmask 261120   ;;  %v80_v14 = vstv %s281_s3  ;;  %s129_s3 = sshll.u32 %s282_s4, 4  ;;  %s130_s3 = int_to_ptr.hbm [resolvable:$true] %s129_s3 }
   0xc   :  { %v52_v2 = vld [vmem:[#allocation6] sm:$0xff]  ;;  %v57_v3 = vpack.c.bf16 %v55_v1, %v54_v0  ;;  %v53_v4 = vld [vmem:[#allocation6 + $0x8] sm:$0xff]  ;;  %v50_v6 = vld [vmem:[#allocation3] sm:$0xff]  ;;  %vm120_vm4 = vcmask 57344  }
   0xd   :  { %v56_v5 = vpack.c.bf16 %v53_v4, %v52_v2  ;;  %v51_v7 = vpack.c.bf16 %v50_v6, %v50_v6  ;;  %v147_v8 = vld [vmem:[%s280_s2] ss:$0 sm:$0xff]  ;;  %v78_v12 = vld [vmem:[%s280_s2 + $0x1] sm:$0x1]  ;;  %s234_s2 = smov [#allocation8]  }
   0xe   :  { %70 = vmatpush.bf16.msra.mxu0 %v57_v3  ;;  %s127_s5 = sshll.u32 %s234_s2, 4  ;;  %s128_s5 = int_to_ptr.vmem [resolvable:$true] %s127_s5 }
  0x12   :  { %71 = vmatpush.bf16.msra.mxu0 %v56_v5 }
  0x15   :  { %140 = vmatmul.msk.bf16.vlgmr.msra.gmra.mxu0 %vm60_vm0, %v51_v7 }
  0x92   :  { %v73_v9 = vpop.f32.mrf.mxu0 }
  0x93   :  { %v74_v10 = vadd.f32 %v147_v8, %v73_v9 }
  0x95   :  { %v77_v11 = vmax.f32 %v74_v10, 0.0 }
  0x97   :  { %96 = vmatpush.xpose.msra.mxu1 %v77_v11 }
  0x9a   :  { %v75_v13 = vpop.f32.mrf.mxu0  ;;  %97 = vmatmul.f32.vlgmr.msra.gmra.mxu1 %v78_v12 }
 0x117   :  { %v98_v15 = vpop.f32.mrf.mxu1 }
 0x118   :  { %v99_v16 = vadd.f32 %v98_v15, %v80_v14 }
 0x11a   :  { %v141_v17 = vmul.f32 -1.442695, %v99_v16 }
 0x11c   :  { %148 = vpow2.f32 %v141_v17 }
 0x122   :  { %v149_v18 = vpop.eup %148 }
 0x123   :  { %v104_v19 = vadd.f32 1.0, %v149_v18 }
 0x125   :  { %150 = vrcp.f32 %v104_v19  ;;  %v116_v23 = vand.u32 2147483648, %v104_v19  ;;  %v114_v25 = vand.u32 2147483647, %v104_v19  ;;  %vm110_vm2 = vweird.f32 %v104_v19 }
 0x127   :  { %v117_v27 = vor.u32 1.1754944e-38, %v116_v23  ;;  %vm115_vm5 = vcmp.eq.f32.partialorder %v114_v25, 8.507059e+37 }
 0x12b   :  { %v151_v20 = vpop.eup %150 }
 0x12c   :  { %v106_v21 = vmul.f32 %v151_v20, %v104_v19  ;;  %vm111_vm1 = vweird.f32 %v151_v20 }
 0x12d   :  { %vm112_vm3 = vmor %vm110_vm2, %vm111_vm1 }
 0x12e   :  { %v107_v22 = vsub.f32 1.0, %v106_v21 }
 0x130   :  { %v108_v24 = vmul.f32 %v151_v20, %v107_v22 }
 0x132   :  { %v109_v26 = vadd.f32 %v151_v20, %v108_v24 }
 0x134   :  { %v113_v28 = vsel %vm112_vm3, %v151_v20, %v109_v26 }
 0x135   :  { %v118_v29 = vsel %vm115_vm5, %v117_v27, %v113_v28 }
 0x136   :  { %121 = vst.msk [vmem:[#allocation8] sm:$0x1] %vm120_vm4, %v118_v29 }
 0x137   :  { %132 = dma.vmem_to_hbm [thread:$0]  %s128_s5, 16, %s130_s3, [#allocation5]  }
 0x138   :  { %228 = dma.done.wait [#allocation5], 16  }
 0x139   :  { %229 = vsyncadd [#allocation5], 4294967280 }
 0x13a   :  { %137 = vsyncpa [#allocation4], 1 }
 0x13b   :  { %138 = vsyncpa [#allocation7], 1 }
 0x13c   :  { %139 = vsyncpa [#allocation5], 1 }

</bundles_post_ra>
